<compile_context>
chip_gen: v7x
topology: tpu7x:2x2x1
jax: 0.10.0
libtpu: 0.0.40
codegen_flags: <defaults>
</compile_context>

<pallas_src>
import functools

import jax
import jax.numpy as jnp
from jax.experimental import pallas as pl
from jax.experimental.pallas import tpu as pltpu


def _round_up(x, m):
    return (x + m - 1) // m * m


# ----------------------------------------------------------------------------
# Fused forward kernel (image tower + similarity + softmax; text tower cached)
# ----------------------------------------------------------------------------
def _fused_clip_forward_kernel(xp_ref, wimg_ref, txtn_ref, probs_ref,
                               *, num_classes):
    """Fused CLIP forward for one batch tile.

    xp_ref   : [P, Bt, K_pad]   bf16  flattened image patches (zero padded),
                                      patch axis leading so the pooled sum
                                      streams row-by-row.
    wimg_ref : [K_pad, D_pad]   bf16  (w_patch_embed @ w_img_proj) / P
    txtn_ref : [C_pad, D_pad]   bf16  L2-normalized text features with
                                      logit_scale folded in (cached).
    probs_ref: [Bt, C_pad]      f32   softmax(logits_per_image)
    """
    n_patches, bt, kp = xp_ref.shape

    # ---- image tower: stream the patch sum (1/P folded into wimg) ----------
    # Only the [Bt, K] f32 accumulator stays live; each bf16 patch row is cast
    # and consumed immediately (equivalent to lax.fori_loop(..., unroll=True)
    # at this static, tiny trip count).
    pooled = jnp.zeros((bt, kp), jnp.float32)
    for p in range(n_patches):
        pooled = pooled + xp_ref[p].astype(jnp.float32)

    img_f = jnp.dot(pooled.astype(jnp.bfloat16), wimg_ref[...],
                    preferred_element_type=jnp.float32)          # [Bt, D_pad]

    # ---- L2 normalize image features (eps guards all-zero padded rows) -----
    eps = jnp.float32(1e-12)
    img_n = img_f * jax.lax.rsqrt(
        jnp.sum(img_f * img_f, axis=-1, keepdims=True) + eps)

    # ---- scaled cosine similarity: contract last dims, no explicit .T ------
    # logit_scale is already folded into txtn.
    logits = jax.lax.dot_general(
        img_n.astype(jnp.bfloat16), txtn_ref[...],
        (((1,), (1,)), ((), ())),
        preferred_element_type=jnp.float32)                      # [Bt, C_pad]

    # Mask padded class columns so they get zero probability.
    col = jax.lax.broadcasted_iota(jnp.int32, logits.shape, 1)
    logits = jnp.where(col < num_classes, logits, jnp.float32(-1e30))

    # ---- softmax over classes (f32 epilogue; reciprocal on the EUP slot) ---
    m = jnp.max(logits, axis=-1, keepdims=True)
    e = jnp.exp(logits - m)
    denom = jnp.sum(e, axis=-1, keepdims=True)
    probs_ref[...] = e * pl.reciprocal(denom, approx=True)


# ----------------------------------------------------------------------------
# Jitted wrapper: relayout + pad + cast + pallas_call + slice in ONE dispatch
# ----------------------------------------------------------------------------
def _clip_forward(image, w_img_comb_pad, txt_feat_pad, *,
                  patch, patch_dim, k_pad, num_patches, num_classes):
    B, C, H, W = image.shape
    p = patch
    P = (H // p) * (W // p)

    # patch extraction straight into [P, B, patch_dim] (NCHW input like the
    # PyTorch module); under jit XLA fuses relayout + pad + bf16 cast into one
    # HBM pass feeding the kernel's pipelined DMA.
    x = image.reshape(B, C, H // p, p, W // p, p)
    x = jnp.transpose(x, (2, 4, 0, 1, 3, 5)).reshape(P, B, patch_dim)

    b_pad = _round_up(B, 8)
    bt = min(b_pad, 256)               # batch tile; parallel grid axis
    b_pad = _round_up(b_pad, bt)

    xp = (jnp.zeros((P, b_pad, k_pad), jnp.bfloat16)
          .at[:, :B, :patch_dim].set(x.astype(jnp.bfloat16)))

    c_pad, d_pad = txt_feat_pad.shape

    kernel = functools.partial(_fused_clip_forward_kernel,
                               num_classes=num_classes)
    probs_pad = pl.pallas_call(
        kernel,
        out_shape=jax.ShapeDtypeStruct((b_pad, c_pad), jnp.float32),
        grid=(b_pad // bt,),
        in_specs=[
            pl.BlockSpec((P, bt, k_pad), lambda i: (0, i, 0)),
            pl.BlockSpec((k_pad, d_pad), lambda i: (0, 0)),
            pl.BlockSpec((c_pad, d_pad), lambda i: (0, 0)),
        ],
        out_specs=pl.BlockSpec((bt, c_pad), lambda i: (i, 0)),
        compiler_params=pltpu.CompilerParams(
            dimension_semantics=("parallel",)),
    )(xp, w_img_comb_pad, txt_feat_pad)

    return probs_pad[:B, :num_classes]


# ----------------------------------------------------------------------------
# DomainIncrementalCLIP (synthetic weights, deterministic init)
# ----------------------------------------------------------------------------
class DomainIncrementalCLIP:
    def __init__(self, *, img_channels=4, img_size=16, patch=8,
                 embed_dim=32, vocab_size=64, seq_len=8, seed=0):
        self.patch = patch
        self.embed_dim = embed_dim
        self.seq_len = seq_len
        self.vocab_size = vocab_size
        self.num_patches = (img_size // patch) ** 2
        patch_dim = img_channels * patch * patch
        self.patch_dim = patch_dim

        k = jax.random.PRNGKey(seed)
        k_pe, k_ip, k_te, k_pos, k_tp = jax.random.split(k, 5)
        s = 0.02
        # Image tower params (f32 masters, bf16 padded copies for the MXU).
        self.w_patch_embed = s * jax.random.normal(
            k_pe, (patch_dim, embed_dim), jnp.float32)
        self.w_img_proj = s * jax.random.normal(
            k_ip, (embed_dim, embed_dim), jnp.float32)
        # Text tower params.
        self.tok_embed = s * jax.random.normal(
            k_te, (vocab_size, embed_dim), jnp.float32)
        self.pos_embed = s * jax.random.normal(
            k_pos, (seq_len, embed_dim), jnp.float32)
        self.w_txt_proj = s * jax.random.normal(
            k_tp, (embed_dim, embed_dim), jnp.float32)
        # CLIP logit scale: exp(log(1/0.07)).
        self.logit_scale = float(jnp.exp(jnp.log(1.0 / 0.07)))

        # --- padded bf16 image weight (lane-dense layout) --------------------
        # mean-pool commutes with the linear layers -> fold both image matmuls
        # AND the 1/num_patches mean into one combined weight (host-side, once).
        self.d_pad = _round_up(embed_dim, 128)
        self.k_pad = _round_up(patch_dim, 128)
        w_img_comb = (self.w_patch_embed @ self.w_img_proj) * (
            1.0 / float(self.num_patches))                        # [K, D]
        self.w_img_comb_pad = (
            jnp.zeros((self.k_pad, self.d_pad), jnp.bfloat16)
            .at[:patch_dim, :embed_dim].set(w_img_comb.astype(jnp.bfloat16)))

        self.text_tokens = None      # set by tokenize()
        self.txt_feat_pad = None     # cached normalized+scaled text features
        self.num_classes = 0
        self._jit_forward = None

    # --- "clip.tokenize" stand-in + text tower precompute --------------------
    def tokenize(self, class_names):
        n = len(class_names)
        toks = [[(7 * c + 3 * j + 1) % self.vocab_size
                 for j in range(self.seq_len)] for c in range(n)]
        self.text_tokens = jnp.asarray(toks, jnp.int32)   # [C, seq_len]

        # Text features are invariant across forward calls: compute the full
        # text tower ONCE here (f32), L2 normalize, fold logit_scale in, pad
        # to a lane-dense [C_pad, D_pad] bf16 slab for the kernel.
        t = jnp.take(self.tok_embed, self.text_tokens, axis=0) \
            + self.pos_embed[None, :, :]
        txt_f = jnp.mean(t, axis=1) @ self.w_txt_proj             # [C, D] f32
        txt_n = txt_f / jnp.linalg.norm(txt_f, axis=-1, keepdims=True)
        txt_n = txt_n * jnp.float32(self.logit_scale)

        self.num_classes = n
        c_pad = _round_up(n, 128)
        self.txt_feat_pad = (
            jnp.zeros((c_pad, self.d_pad), jnp.bfloat16)
            .at[:n, :self.embed_dim].set(txt_n.astype(jnp.bfloat16)))
        self._jit_forward = None   # invalidate cached jit on re-tokenize

    # --- forward: probs = softmax(logits_per_image, dim=-1) ------------------
    def forward(self, image):
        assert self.txt_feat_pad is not None, "call tokenize() first"
        B, C, H, W = image.shape
        assert (H // self.patch) * (W // self.patch) == self.num_patches
        assert C * self.patch * self.patch == self.patch_dim

        if self._jit_forward is None:
            self._jit_forward = jax.jit(functools.partial(
                _clip_forward,
                patch=self.patch,
                patch_dim=self.patch_dim,
                k_pad=self.k_pad,
                num_patches=self.num_patches,
                num_classes=self.num_classes))

        return self._jit_forward(image, self.w_img_comb_pad, self.txt_feat_pad)


# ----------------------------------------------------------------------------
if __name__ == "__main__":
    B, C, H, W = 2, 4, 16, 16
    num_classes = 8

    model = DomainIncrementalCLIP(img_channels=C, img_size=H, patch=8,
                                  embed_dim=32, vocab_size=64, seq_len=8,
                                  seed=0)
    model.tokenize([f"class_{i}" for i in range(num_classes)])

    key = jax.random.PRNGKey(0)
    image = jax.random.normal(key, (B, C, H, W), jnp.float32)  # NCHW

    probs = jax.block_until_ready(model.forward(image))

    assert probs.shape == (B, num_classes)
    # softmax rows must sum to ~1 (approx EUP reciprocal + bf16 MXU operands)
    assert bool(jnp.allclose(jnp.sum(probs, axis=-1), 1.0, atol=1e-2))

    # pure-JAX f32 reference of the same forward semantics
    def reference(img):
        p = model.patch
        x = img.reshape(B, C, H // p, p, W // p, p)
        x = jnp.transpose(x, (0, 2, 4, 1, 3, 5)).reshape(B, -1, C * p * p)
        emb = x @ model.w_patch_embed                        # [B, P, D]
        img_f = jnp.mean(emb, axis=1) @ model.w_img_proj     # [B, D]
        t = jnp.take(model.tok_embed, model.text_tokens, axis=0) \
            + model.pos_embed[None, :, :]
        txt_f = jnp.mean(t, axis=1) @ model.w_txt_proj       # [Cn, D]
        img_f = img_f / jnp.linalg.norm(img_f, axis=-1, keepdims=True)
        txt_f = txt_f / jnp.linalg.norm(txt_f, axis=-1, keepdims=True)
        logits = model.logit_scale * img_f @ txt_f.T
        return jax.nn.softmax(logits, axis=-1)

    ref = reference(image)
    # loose tolerance: kernel feeds bf16 to the MXU, uses approx reciprocal,
    # and the cached text features / combined image weight are bf16-rounded
    assert bool(jnp.allclose(probs, ref, atol=0.1))

    print("KERNEL_OK")
</pallas_src>

<mosaic_0001>
module attributes {stable_mosaic.version = 11 : i64} {
  func.func @_fused_clip_forward_kernel(%arg0: i32, %arg1: memref<4x8x256xbf16, #tpu.memory_space<vmem>>, %arg2: memref<256x128xbf16, #tpu.memory_space<vmem>>, %arg3: memref<128x128xbf16, #tpu.memory_space<vmem>>, %arg4: memref<8x128xf32, #tpu.memory_space<vmem>>) attributes {dimension_semantics = [#tpu.dimension_semantics<parallel>], iteration_bounds = array<i64: 1>, scalar_prefetch = 0 : i64, scratch_operands = 0 : i64, tpu.core_type = #tpu.core_type<tc>, window_params = [{transform_indices = @transform_0, window_bounds = array<i64: 4, 8, 256>}, {pipeline_mode = #tpu.pipeline_mode<synchronous>, transform_indices = @transform_1, window_bounds = array<i64: 256, 128>}, {pipeline_mode = #tpu.pipeline_mode<synchronous>, transform_indices = @transform_2, window_bounds = array<i64: 128, 128>}, {transform_indices = @transform_3, window_bounds = array<i64: 8, 128>}]} {
    %cst = arith.constant 0.000000e+00 : f32
    %0 = vector.broadcast %cst : f32 to vector<8x256xf32>
    %c0 = arith.constant 0 : index
    %c0_0 = arith.constant 0 : index
    %c0_1 = arith.constant 0 : index
    %1 = vector.load %arg1[%c0, %c0_0, %c0_1] : memref<4x8x256xbf16, #tpu.memory_space<vmem>>, vector<1x8x256xbf16>
    %2 = vector.shape_cast %1 : vector<1x8x256xbf16> to vector<8x256xbf16>
    %3 = arith.extf %2 : vector<8x256xbf16> to vector<8x256xf32>
    %4 = arith.addf %0, %3 : vector<8x256xf32>
    %c1 = arith.constant 1 : index
    %c0_2 = arith.constant 0 : index
    %c0_3 = arith.constant 0 : index
    %5 = vector.load %arg1[%c1, %c0_2, %c0_3] : memref<4x8x256xbf16, #tpu.memory_space<vmem>>, vector<1x8x256xbf16>
    %6 = vector.shape_cast %5 : vector<1x8x256xbf16> to vector<8x256xbf16>
    %7 = arith.extf %6 : vector<8x256xbf16> to vector<8x256xf32>
    %8 = arith.addf %4, %7 : vector<8x256xf32>
    %c2 = arith.constant 2 : index
    %c0_4 = arith.constant 0 : index
    %c0_5 = arith.constant 0 : index
    %9 = vector.load %arg1[%c2, %c0_4, %c0_5] : memref<4x8x256xbf16, #tpu.memory_space<vmem>>, vector<1x8x256xbf16>
    %10 = vector.shape_cast %9 : vector<1x8x256xbf16> to vector<8x256xbf16>
    %11 = arith.extf %10 : vector<8x256xbf16> to vector<8x256xf32>
    %12 = arith.addf %8, %11 : vector<8x256xf32>
    %c3 = arith.constant 3 : index
    %c0_6 = arith.constant 0 : index
    %c0_7 = arith.constant 0 : index
    %13 = vector.load %arg1[%c3, %c0_6, %c0_7] : memref<4x8x256xbf16, #tpu.memory_space<vmem>>, vector<1x8x256xbf16>
    %14 = vector.shape_cast %13 : vector<1x8x256xbf16> to vector<8x256xbf16>
    %15 = arith.extf %14 : vector<8x256xbf16> to vector<8x256xf32>
    %16 = arith.addf %12, %15 : vector<8x256xf32>
    %17 = arith.truncf %16 : vector<8x256xf32> to vector<8x256xbf16>
    %c0_8 = arith.constant 0 : index
    %c0_9 = arith.constant 0 : index
    %18 = vector.load %arg2[%c0_8, %c0_9] : memref<256x128xbf16, #tpu.memory_space<vmem>>, vector<256x128xbf16>
    %cst_10 = arith.constant dense<0.000000e+00> : vector<8x128xf32>
    %19 = tpu.matmul %17, %18, %cst_10 {dimension_numbers = #tpu.dot_dimension_numbers<[1], [0], [0], [1], [0, 0, 1, 1], [], []>} : vector<8x256xbf16>, vector<256x128xbf16>, vector<8x128xf32> -> vector<8x128xf32>
    %20 = arith.mulf %19, %19 : vector<8x128xf32>
    %cst_11 = arith.constant dense<0.000000e+00> : vector<8xf32>
    %21 = vector.multi_reduction <add>, %20, %cst_11 [1] : vector<8x128xf32> to vector<8xf32>
    %22 = vector.shape_cast %21 : vector<8xf32> to vector<8x1xf32>
    %cst_12 = arith.constant 9.99999996E-13 : f32
    %23 = vector.broadcast %cst_12 : f32 to vector<8x1xf32>
    %24 = arith.addf %22, %23 : vector<8x1xf32>
    %25 = math.rsqrt %24 : vector<8x1xf32>
    %26 = vector.broadcast %25 : vector<8x1xf32> to vector<8x128xf32>
    %27 = arith.mulf %19, %26 : vector<8x128xf32>
    %28 = arith.truncf %27 : vector<8x128xf32> to vector<8x128xbf16>
    %c0_13 = arith.constant 0 : index
    %c0_14 = arith.constant 0 : index
    %29 = vector.load %arg3[%c0_13, %c0_14] : memref<128x128xbf16, #tpu.memory_space<vmem>>, vector<128x128xbf16>
    %cst_15 = arith.constant dense<0.000000e+00> : vector<8x128xf32>
    %30 = tpu.matmul %28, %29, %cst_15 {dimension_numbers = #tpu.dot_dimension_numbers<[1], [1], [0], [0], [0, 0, 1, 0], [], []>} : vector<8x128xbf16>, vector<128x128xbf16>, vector<8x128xf32> -> vector<8x128xf32>
    %31 = tpu.iota {dimensions = array<i32: 1>} : vector<8x128xi32>
    %c8_i32 = arith.constant 8 : i32
    %32 = vector.broadcast %c8_i32 : i32 to vector<8x128xi32>
    %33 = arith.cmpi slt, %31, %32 : vector<8x128xi32>
    %cst_16 = arith.constant -1.000000e+30 : f32
    %34 = vector.broadcast %cst_16 : f32 to vector<8x128xf32>
    %35 = arith.select %33, %30, %34 : vector<8x128xi1>, vector<8x128xf32>
    %cst_17 = arith.constant dense<0xFF800000> : vector<8xf32>
    %36 = vector.multi_reduction <maximumf>, %35, %cst_17 [1] : vector<8x128xf32> to vector<8xf32>
    %37 = vector.shape_cast %36 : vector<8xf32> to vector<8x1xf32>
    %38 = vector.broadcast %37 : vector<8x1xf32> to vector<8x128xf32>
    %39 = arith.subf %35, %38 : vector<8x128xf32>
    %40 = math.exp %39 : vector<8x128xf32>
    %cst_18 = arith.constant dense<0.000000e+00> : vector<8xf32>
    %41 = vector.multi_reduction <add>, %40, %cst_18 [1] : vector<8x128xf32> to vector<8xf32>
    %42 = vector.shape_cast %41 : vector<8xf32> to vector<8x1xf32>
    %43 = tpu.reciprocal %42 {approx = true} : vector<8x1xf32> -> vector<8x1xf32>
    %44 = vector.broadcast %43 : vector<8x1xf32> to vector<8x128xf32>
    %45 = arith.mulf %40, %44 : vector<8x128xf32>
    %c0_19 = arith.constant 0 : index
    %c0_20 = arith.constant 0 : index
    %46 = vector.load %arg4[%c0_19, %c0_20] : memref<8x128xf32, #tpu.memory_space<vmem>>, vector<8x128xf32>
    tpu.vector_store %arg4[%c0_19, %c0_20], %45 {strides = array<i32>} : memref<8x128xf32, #tpu.memory_space<vmem>>, vector<8x128xf32>,
    return
  }
  func.func @transform_0(%arg0: i32) -> (i32, i32, i32) {
    %c0_i32 = arith.constant 0 : i32
    %c0_i32_0 = arith.constant 0 : i32
    %c0_i32_1 = arith.constant 0 : i32
    return %c0_i32, %arg0, %c0_i32_0 : i32, i32, i32
  }
  func.func @transform_1(%arg0: i32) -> (i32, i32) {
    %c0_i32 = arith.constant 0 : i32
    %c0_i32_0 = arith.constant 0 : i32
    %c0_i32_1 = arith.constant 0 : i32
    return %c0_i32, %c0_i32_0 : i32, i32
  }
  func.func @transform_2(%arg0: i32) -> (i32, i32) {
    %c0_i32 = arith.constant 0 : i32
    %c0_i32_0 = arith.constant 0 : i32
    %c0_i32_1 = arith.constant 0 : i32
    return %c0_i32, %c0_i32_0 : i32, i32
  }
  func.func @transform_3(%arg0: i32) -> (i32, i32) {
    %c0_i32 = arith.constant 0 : i32
    %c0_i32_0 = arith.constant 0 : i32
    return %arg0, %c0_i32 : i32, i32
  }
}

</mosaic_0001>

<bundles_post_ra>
// kernel: _clip_forward.1
= control target key start
LH: loop header
LB: loop body
LE: loop exit
PB: predicated region body
PF: predicated region fallthrough
CT: control target
= control target key end

     0   :  { %v447_v36 = vmov 0.0   ;;  %vm448_vm0 = vmmov 0   ;;  %v319_v56 = vlaneseq  ;;  %s556_s1 = inlined_call_operand.vmem [shape: bf16[256,128], index: 1, kind: input, shape index: {}]   ;;  %s557_s0 = inlined_call_operand.vmem [shape: bf16[4,8,256], index: 0, kind: input, shape index: {}]   ;;  %s558_s2 = inlined_call_operand.vmem [shape: bf16[128,128], index: 2, kind: input, shape index: {}]   ;;  %s559_s3 = inlined_call_operand.vmem [shape: f32[8,128], index: 3, kind: output, shape index: {}]  }
   0x1   :  { %v417_v0 = vld [vmem:[%s556_s1 + $0x40] sm:$0xff]   ;;  %v419_v2 = vld [vmem:[%s556_s1 + $0x48] sm:$0xff]   ;;  %v421_v4 = vld [vmem:[%s556_s1 + $0x50] sm:$0xff]   ;;  %395 = vmatprep.subr.bf16.mxu1 %v447_v36  ;;  %411 = vmatprep.mubr.msk.bf16.mxu1 %vm448_vm0, %v447_v36 }
   0x2   :  { %v418_v1 = vld [vmem:[%s556_s1] sm:$0xff]   ;;  %364 = vmatprep.subr.bf16.mxu0 %v417_v0  ;;  %v420_v3 = vld [vmem:[%s556_s1 + $0x8] sm:$0xff]   ;;  %v422_v5 = vld [vmem:[%s556_s1 + $0x10] sm:$0xff]   ;;  %v320_v57 = vand.u32 127, %v319_v56 }
   0x3   :  { %365 = vmatpush3.bf16.msra.mxu0 %v418_v1  ;;  %v423_v6 = vld [vmem:[%s556_s1 + $0x58] sm:$0xff]   ;;  %v425_v8 = vld [vmem:[%s556_s1 + $0x60] sm:$0xff]   ;;  %v427_v10 = vld [vmem:[%s556_s1 + $0x68] sm:$0xff]  }
   0x4   :  { %366 = vmatprep.subr.bf16.mxu0 %v419_v2  ;;  %v424_v7 = vld [vmem:[%s556_s1 + $0x18] sm:$0xff]   ;;  %v426_v9 = vld [vmem:[%s556_s1 + $0x20] sm:$0xff]   ;;  %v337_v12 = vld [vmem:[%s557_s0 + $0x8] sm:$0xff]  ;;  %vm321_vm1 = vcmp.lt.s32.totalorder %v320_v57, 8 }
   0x5   :  { %v15_v11 = vld [vmem:[%s557_s0] sm:$0xff]  ;;  %v338_v13 = vld [vmem:[%s557_s0 + $0x10] sm:$0xff]  ;;  %v22_v16 = vunpack.c.l.bf16 %v337_v12  ;;  %v23_v17 = vunpack.c.h.bf16 %v337_v12  ;;  %v339_v18 = vld [vmem:[%s557_s0 + $0x18] sm:$0xff] }
   0x6   :  { %v16_v14 = vunpack.c.l.bf16 %v15_v11  ;;  %v17_v15 = vunpack.c.h.bf16 %v15_v11  ;;  %v28_v19 = vunpack.c.l.bf16 %v338_v13  ;;  %v29_v20 = vunpack.c.h.bf16 %v338_v13  ;;  %v428_v21 = vld [vmem:[%s556_s1 + $0x28] sm:$0xff]   ;;  %v429_v25 = vld [vmem:[%s556_s1 + $0x70] sm:$0xff]   ;;  %v431_v31 = vld [vmem:[%s556_s1 + $0x78] sm:$0xff]  }
   0x7   :  { %367 = vmatpush3.bf16.msra.mxu0 %v420_v3  ;;  %v35_v23 = vunpack.c.h.bf16 %v339_v18  ;;  %v34_v27 = vunpack.c.l.bf16 %v339_v18  ;;  %v430_v29 = vld [vmem:[%s556_s1 + $0x30] sm:$0xff]   ;;  %v432_v34 = vld [vmem:[%s556_s1 + $0x38] sm:$0xff]   ;;  %v433_v37 = vld [vmem:[%s558_s2] sm:$0xff]  }
   0x8   :  { %368 = vmatprep.subr.bf16.mxu0 %v421_v4  ;;  %v25_v22 = vadd.f32 %v23_v17, %v17_v15  ;;  %v24_v24 = vadd.f32 %v22_v16, %v16_v14  ;;  %396 = vmatpush3.bf16.xpose.msra.mxu1 %v433_v37  ;;  %v434_v38 = vld [vmem:[%s558_s2 + $0x8] sm:$0xff]   ;;  %v435_v39 = vld [vmem:[%s558_s2 + $0x10] sm:$0xff]   ;;  %v436_v40 = vld [vmem:[%s558_s2 + $0x18] sm:$0xff]  }
   0x9   :  { %397 = vmatprep.subr.bf16.mxu1 %v447_v36  ;;  %v437_v41 = vld [vmem:[%s558_s2 + $0x20] sm:$0xff]   ;;  %v438_v42 = vld [vmem:[%s558_s2 + $0x28] sm:$0xff]   ;;  %v439_v49 = vld [vmem:[%s558_s2 + $0x30] sm:$0xff]  }
   0xa   :  { %v31_v26 = vadd.f32 %v29_v20, %v25_v22  ;;  %v30_v28 = vadd.f32 %v28_v19, %v24_v24  ;;  %v440_v50 = vld [vmem:[%s558_s2 + $0x38] sm:$0xff]  }
   0xb   :  { %369 = vmatpush3.bf16.msra.mxu0 %v422_v5 }
   0xc   :  { %370 = vmatprep.subr.bf16.mxu0 %v423_v6  ;;  %v37_v30 = vadd.f32 %v35_v23, %v31_v26  ;;  %v36_v33 = vadd.f32 %v34_v27, %v30_v28 }
   0xe   :  { %v39_v32 = vpack.c.bf16 %v37_v30, %v37_v30  ;;  %v38_v35 = vpack.c.bf16 %v36_v33, %v36_v33 }
   0xf   :  { %371 = vmatpush3.bf16.msra.mxu0 %v424_v7 }
  0x10   :  { %372 = vmatprep.subr.bf16.mxu0 %v425_v8  ;;  %200 = vmatprep.mubr.bf16.mxu0 %v39_v32 }
  0x11   :  { %398 = vmatpush3.bf16.xpose.msra.mxu1 %v434_v38 }
  0x12   :  { %399 = vmatprep.subr.bf16.mxu1 %v447_v36 }
  0x13   :  { %373 = vmatpush3.bf16.msra.mxu0 %v426_v9 }
  0x14   :  { %374 = vmatprep.subr.bf16.mxu0 %v427_v10 }
  0x17   :  { %375 = vmatpush3.bf16.msra.mxu0 %v428_v21 }
  0x18   :  { %376 = vmatprep.subr.bf16.mxu0 %v429_v25 }
  0x19   :  { %400 = vmatpush3.bf16.xpose.msra.mxu1 %v435_v39 }
  0x1a   :  { %401 = vmatprep.subr.bf16.mxu1 %v447_v36 }
  0x1b   :  { %377 = vmatpush3.bf16.msra.mxu0 %v430_v29 }
  0x1c   :  { %378 = vmatprep.subr.bf16.mxu0 %v431_v31 }
  0x1f   :  { %379 = vmatpush3.bf16.msra.mxu0 %v432_v34 }
  0x21   :  { %402 = vmatpush3.bf16.xpose.msra.mxu1 %v436_v40 }
  0x22   :  { %201 = vmatmul.mubr.bf16.vlgmr.msra.gmra.mrb[0].mxu0 %v38_v35  ;;  %403 = vmatprep.subr.bf16.mxu1 %v447_v36 }
  0x29   :  { %404 = vmatpush3.bf16.xpose.msra.mxu1 %v437_v41 }
  0x2a   :  { %405 = vmatprep.subr.bf16.mxu1 %v447_v36 }
  0x31   :  { %406 = vmatpush3.bf16.xpose.msra.mxu1 %v438_v42 }
  0x32   :  { %407 = vmatprep.subr.bf16.mxu1 %v447_v36 }
  0x39   :  { %408 = vmatpush3.bf16.xpose.msra.mxu1 %v439_v49 }
  0x3a   :  { %409 = vmatprep.subr.bf16.mxu1 %v447_v36 }
  0x41   :  { %410 = vmatpush3.bf16.xpose.msra.mxu1 %v440_v50 }
  0xf5   :  { %v380_v43 = vpop.f32.mrb[0].mxu0 }
  0xf6   :  { %v381_v44 = vpop.f32.mrb[1].mxu0 }
  0xf7   :  { %v382_v45 = vadd.f32 %v381_v44, %v380_v43  ;;  %v383_v46 = vpop.f32.mrb[2].mxu0 }
  0xf8   :  { %v384_v47 = vpop.f32.mrb[3].mxu0 }
  0xf9   :  { %v208_v48 = vmul.f32 %v382_v45, %v382_v45 }
  0xfb   :  { %209 = vadd.xlane.f32.xlu0 %v208_v48 }
 0x188   :  { %v210_v51 = vpop.xlane.xlu0 %209 }
 0x189   :  { %v211_v52 = vadd.f32 1e-12, %v210_v51 }
 0x18b   :  { %441 = vrsqrt.f32 %v211_v52 }
 0x195   :  { %v442_v53 = vpop.eup %441 }
 0x196   :  { %v213_v54 = vmul.f32 %v442_v53, %v382_v45 }
 0x198   :  { %v214_v55 = vpack.c.bf16 %v213_v54, %v213_v54 }
 0x19a   :  { %412 = vmatmul.mubr.bf16.vlgmr.msra.gmra.mrb[0].mxu1 %v214_v55 }
 0x26d   :  { %v313_v58 = vpop.f32.mrb[0].mxu1 }
 0x26e   :  { %v413_v59 = vpop.f32.mrb[1].mxu1  ;;  %v322_v60 = vsel %vm321_vm1, %v313_v58, -1e+30 }
 0x26f   :  { %323 = vmax.xlane.f32.xlu0 %v322_v60  ;;  %v316_v61 = vpop.f32.mrb[2].mxu1 }
 0x270   :  { %v414_v62 = vpop.f32.mrb[3].mxu1 }
 0x2fc   :  { %v324_v63 = vpop.xlane.xlu0 %323 }
 0x2fd   :  { %v325_v0 = vsub.f32 %v322_v60, %v324_v63 }
 0x2ff   :  { %v326_v1 = vmul.f32 1.442695, %v325_v0 }
 0x301   :  { %443 = vpow2.f32 %v326_v1 }
 0x30b   :  { %v444_v2 = vpop.eup %443 }
 0x30c   :  { %328 = vadd.xlane.f32.xlu1 %v444_v2 }
 0x399   :  { %v329_v3 = vpop.xlane.xlu1 %328 }
 0x39a   :  { %445 = vrcp.f32 %v329_v3 }
 0x3a4   :  { %v446_v4 = vpop.eup %445 }
 0x3a5   :  { %v331_v5 = vmul.f32 %v446_v4, %v444_v2 }
 0x3a7   :  { %332 = vst [vmem:[%s559_s3] sm:$0xff] %v331_v5 }

</bundles_post_ra>
